<compile_context>
chip_gen: v5e
topology: v5e:2x2
jax: 0.10.0
libtpu: 0.0.40
codegen_flags: <defaults>
</compile_context>

<pallas_src>
import functools

import jax
import jax.numpy as jnp
from jax import lax
from jax.experimental import pallas as pl
from jax.experimental.pallas import tpu as pltpu


def _round_up(x, m):
  return (x + m - 1) // m * m


def _block_diag(a, b):
  m1, n1 = a.shape
  m2, n2 = b.shape
  out = jnp.zeros((m1 + m2, n1 + n2), a.dtype)
  out = out.at[:m1, :n1].set(a)
  out = out.at[m1:, n1:].set(b)
  return out


# -----------------------------------------------------------------------------
# Kernel
# -----------------------------------------------------------------------------
def _bilinear_gaussian_kernel(x_ref, w1_ref, b1_ref, w2_ref, b2_ref,
                              wm_ref, bm_ref, wh_ref, bh_ref, out_ref,
                              *, pb, num_outputs, min_std, max_std):
  f32 = jnp.float32
  bf16 = jnp.bfloat16

  # xcat = [x1 | x2]  -> fused MLP (both branches) via block-diagonal weights.
  x = x_ref[...].astype(bf16)
  h = jnp.dot(x, w1_ref[...], preferred_element_type=f32) + b1_ref[...]
  h = jnp.maximum(h, 0.0)                                   # [h1 | h2]
  g = jnp.dot(h.astype(bf16), w2_ref[...], preferred_element_type=f32) + b2_ref[...]
  g = jnp.maximum(g, 0.0)                                   # [g1 | g2]

  # Fused MultiLinear heads + identity copy of g:
  #   o = [ o1 | g1 | 0pad | o2 | g2 | 0pad ]   (each branch padded to pb lanes)
  o = jnp.dot(g.astype(bf16), wm_ref[...], preferred_element_type=f32) + bm_ref[...]

  # Bilinear products + std input in one elementwise mul (lane-aligned split).
  prod = o[:, :pb] * o[:, pb:]                              # [o1*o2 | g1*g2 | 0]

  # One head matmul: [pool ; ws] -> lane-dense [mu_pre | std_pre | 0pad].
  pre = jnp.dot(prod.astype(bf16), wh_ref[...], preferred_element_type=f32) + bh_ref[...]

  cols = lax.broadcasted_iota(jnp.int32, pre.shape, 1)
  mu = jnp.tanh(pre)                                        # action_activation='tanh'
  std = jnp.exp(jnp.clip(pre, min_std, max_std))            # std_transform='log'
  out_ref[...] = jnp.where(cols < num_outputs, mu, std).astype(out_ref.dtype)


# -----------------------------------------------------------------------------
# Host-side parameter packing (done once)
# -----------------------------------------------------------------------------
def pack_params(params, *, num_outputs, pre_bilinear_size):
  """Pack per-branch f32 params into fused block-diagonal bf16 matrices."""
  (w11, b11, w12, b12, w21, b21, w22, b22,
   wm1, bm1, wm2, bm2, ws, bs) = params
  f32 = jnp.float32
  bf16 = jnp.bfloat16

  h2 = w12.shape[1]
  assert h2 == pre_bilinear_size, "hidden_sizes[-1] must equal pre_bilinear_size"
  op = num_outputs * pre_bilinear_size
  pb = _round_up(op + h2, 128)                  # per-branch padded lane width
  out_pad = _round_up(2 * num_outputs, 128)     # lane-dense output width

  eye = jnp.eye(h2, dtype=f32)

  def _branch_w(wm):                            # (h2, pb): [wm | I | 0pad]
    w = jnp.zeros((h2, pb), f32)
    w = w.at[:, :op].set(wm)
    w = w.at[:, op:op + h2].set(eye)
    return w

  def _branch_b(bm):                            # (1, pb): [bm | 0 | 0pad]
    b = jnp.zeros((1, pb), f32)
    return b.at[:, :op].set(bm.reshape(1, op))

  w1 = _block_diag(w11, w21)                                        # (2D, 2H1)
  b1 = jnp.concatenate([b11.reshape(1, -1), b21.reshape(1, -1)], -1)
  w2 = _block_diag(w12, w22)                                        # (2H1, 2H2)
  b2 = jnp.concatenate([b12.reshape(1, -1), b22.reshape(1, -1)], -1)
  wm = _block_diag(_branch_w(wm1), _branch_w(wm2))                  # (2H2, 2pb)
  bm = jnp.concatenate([_branch_b(bm1), _branch_b(bm2)], -1)

  # Head: rows [0, op) -> pool (sum over pre_bilinear per output head),
  #       rows [op, op+h2) -> conditioned-std weight, rest zero padding.
  pool = (jnp.arange(op)[:, None] // pre_bilinear_size
          == jnp.arange(num_outputs)[None, :]).astype(f32)
  wh = jnp.zeros((pb, out_pad), f32)
  wh = wh.at[:op, :num_outputs].set(pool)
  wh = wh.at[op:op + h2, num_outputs:2 * num_outputs].set(ws)
  bh = jnp.zeros((1, out_pad), f32)
  bh = bh.at[:, num_outputs:2 * num_outputs].set(bs.reshape(1, num_outputs))

  packed = (w1.astype(bf16), b1.astype(f32),
            w2.astype(bf16), b2.astype(f32),
            wm.astype(bf16), bm.astype(f32),
            wh.astype(bf16), bh.astype(f32))
  meta = {"pb": pb, "out_pad": out_pad}
  return packed, meta


# -----------------------------------------------------------------------------
# Wrapper
# -----------------------------------------------------------------------------
def bilinear_gaussian_forward(x1, x2, packed, *, num_outputs, pb, out_pad,
                              min_std, max_std, block_b=512):
  """Returns (mu, std) of the CustomNormal produced by BilinearGaussianNet."""
  w1, b1, w2, b2, wm, bm, wh, bh = packed
  b = x1.shape[0]
  xcat = jnp.concatenate([x1, x2], axis=-1).astype(jnp.float32)
  d2 = xcat.shape[1]

  tb = min(block_b, _round_up(b, 8))
  b_pad = _round_up(b, tb)
  if b_pad != b:
    xcat = jnp.pad(xcat, ((0, b_pad - b), (0, 0)))
  grid = (b_pad // tb,)

  kernel = functools.partial(
      _bilinear_gaussian_kernel, pb=pb, num_outputs=num_outputs,
      min_std=min_std, max_std=max_std)

  def _const_spec(arr):   # weights/biases: resident in VMEM across the grid
    return pl.BlockSpec(arr.shape, lambda i: (0, 0))

  flops = 2 * b_pad * (d2 * w1.shape[1] + w1.shape[1] * w2.shape[1]
                       + w2.shape[1] * wm.shape[1] + pb * out_pad)
  bytes_accessed = (xcat.size * 4 + b_pad * out_pad * 4
                    + sum(int(p.size) * p.dtype.itemsize for p in packed))
  cost = pl.CostEstimate(flops=flops,
                         transcendentals=2 * b_pad * out_pad,
                         bytes_accessed=bytes_accessed)

  out = pl.pallas_call(
      kernel,
      out_shape=jax.ShapeDtypeStruct((b_pad, out_pad), jnp.float32),
      grid=grid,
      in_specs=[pl.BlockSpec((tb, d2), lambda i: (i, 0))]
               + [_const_spec(p) for p in packed],
      out_specs=pl.BlockSpec((tb, out_pad), lambda i: (i, 0)),
      compiler_params=pltpu.CompilerParams(
          dimension_semantics=("parallel",)),
      cost_estimate=cost,
  )(xcat, *packed)

  mu = out[:b, :num_outputs]
  std = out[:b, num_outputs:2 * num_outputs]
  return mu, std


# -----------------------------------------------------------------------------
# Synthetic parameters + pure-JAX reference
# -----------------------------------------------------------------------------
def init_params(key, d_in, h1, h2, num_outputs, pre_bilinear, std_init_bias):
  """Deterministic synthetic parameters (same shapes as the torch module)."""
  ks = jax.random.split(key, 7)
  s = 0.1
  w11 = jax.random.normal(ks[0], (d_in, h1), jnp.float32) * s
  b11 = jnp.zeros((1, h1), jnp.float32)
  w12 = jax.random.normal(ks[1], (h1, h2), jnp.float32) * s
  b12 = jnp.zeros((1, h2), jnp.float32)
  w21 = jax.random.normal(ks[2], (d_in, h1), jnp.float32) * s
  b21 = jnp.zeros((1, h1), jnp.float32)
  w22 = jax.random.normal(ks[3], (h1, h2), jnp.float32) * s
  b22 = jnp.zeros((1, h2), jnp.float32)
  # MultiLinearLayer: num_outputs Linears (h2 -> pre_bilinear), fused so that
  # column o*pre_bilinear + p corresponds to head o, output feature p.
  wm1 = jax.random.normal(ks[4], (h2, num_outputs * pre_bilinear), jnp.float32) * s
  bm1 = jnp.zeros((1, num_outputs * pre_bilinear), jnp.float32)
  wm2 = jax.random.normal(ks[5], (h2, num_outputs * pre_bilinear), jnp.float32) * s
  bm2 = jnp.zeros((1, num_outputs * pre_bilinear), jnp.float32)
  # Conditioned-std head (orthogonal gain 0.01 in torch -> small scale here).
  ws = jax.random.normal(ks[6], (pre_bilinear, num_outputs), jnp.float32) * 0.01
  bs = jnp.full((1, num_outputs), std_init_bias, jnp.float32)
  return (w11, b11, w12, b12, w21, b21, w22, b22, wm1, bm1, wm2, bm2, ws, bs)


def _reference(x1, x2, params, *, num_outputs, pre_bilinear, min_std, max_std):
  (w11, b11, w12, b12, w21, b21, w22, b22, wm1, bm1, wm2, bm2, ws, bs) = params
  h1 = jnp.maximum(x1 @ w11 + b11, 0.0)
  h1 = jnp.maximum(h1 @ w12 + b12, 0.0)
  h2 = jnp.maximum(x2 @ w21 + b21, 0.0)
  h2 = jnp.maximum(h2 @ w22 + b22, 0.0)
  o1 = (h1 @ wm1 + bm1).reshape(-1, num_outputs, pre_bilinear)
  o2 = (h2 @ wm2 + bm2).reshape(-1, num_outputs, pre_bilinear)
  mu = jnp.tanh(jnp.sum(o1 * o2, axis=-1))
  std = jnp.exp(jnp.clip((h1 * h2) @ ws + bs, min_std, max_std))
  return mu, std


def _check(batch, num_inputs, hidden_sizes, num_outputs, pre_bilinear_size,
           min_std, max_std, std_init_bias, seed):
  key = jax.random.PRNGKey(seed)
  k_x1, k_x2, k_p = jax.random.split(key, 3)
  x1 = jax.random.normal(k_x1, (batch, num_inputs), jnp.float32)
  x2 = jax.random.normal(k_x2, (batch, num_inputs), jnp.float32)
  params = init_params(k_p, num_inputs, hidden_sizes[0], hidden_sizes[1],
                       num_outputs, pre_bilinear_size, std_init_bias)
  packed, meta = pack_params(params, num_outputs=num_outputs,
                             pre_bilinear_size=pre_bilinear_size)

  mu, std = bilinear_gaussian_forward(
      x1, x2, packed,
      num_outputs=num_outputs,
      pb=meta["pb"], out_pad=meta["out_pad"],
      min_std=min_std, max_std=max_std)
  jax.block_until_ready((mu, std))

  mu_ref, std_ref = _reference(
      x1, x2, params, num_outputs=num_outputs, pre_bilinear=pre_bilinear_size,
      min_std=min_std, max_std=max_std)
  assert mu.shape == (batch, num_outputs) and std.shape == (batch, num_outputs)
  # bf16 MXU operands -> looser tolerance than the pure-f32 path.
  assert jnp.allclose(mu, mu_ref, atol=2e-2, rtol=2e-2), "mu mismatch vs reference"
  assert jnp.allclose(std, std_ref, atol=2e-2, rtol=2e-2), "std mismatch vs reference"


if __name__ == "__main__":
  # Small shapes consistent with the module's forward (main check).
  _check(batch=2, num_inputs=16, hidden_sizes=(32, 64), num_outputs=8,
         pre_bilinear_size=64, min_std=-5.0, max_std=2.0,
         std_init_bias=-1.0, seed=0)

  # Multi-tile grid + batch-padding coverage (grid=(3,), tb=512, b_pad=1536).
  _check(batch=1037, num_inputs=16, hidden_sizes=(32, 64), num_outputs=8,
         pre_bilinear_size=64, min_std=-5.0, max_std=2.0,
         std_init_bias=-1.0, seed=1)

  # TODO(synk): CustomNormal distribution object / torch.cuda streams have no
  # Pallas equivalent; the kernel returns the (mu, std) that parameterize it.
  print("KERNEL_OK")
</pallas_src>

<mosaic_0001>
module attributes {stable_mosaic.version = 11 : i64} {
  func.func @_bilinear_gaussian_kernel(%arg0: i32, %arg1: memref<8x32xf32, #tpu.memory_space<vmem>>, %arg2: memref<32x64xbf16, #tpu.memory_space<vmem>>, %arg3: memref<1x64xf32, #tpu.memory_space<vmem>>, %arg4: memref<64x128xbf16, #tpu.memory_space<vmem>>, %arg5: memref<1x128xf32, #tpu.memory_space<vmem>>, %arg6: memref<128x1280xbf16, #tpu.memory_space<vmem>>, %arg7: memref<1x1280xf32, #tpu.memory_space<vmem>>, %arg8: memref<640x128xbf16, #tpu.memory_space<vmem>>, %arg9: memref<1x128xf32, #tpu.memory_space<vmem>>, %arg10: memref<8x128xf32, #tpu.memory_space<vmem>>) attributes {dimension_semantics = [#tpu.dimension_semantics<parallel>], iteration_bounds = array<i64: 1>, scalar_prefetch = 0 : i64, scratch_operands = 0 : i64, tpu.core_type = #tpu.core_type<tc>, window_params = [{transform_indices = @transform_0, window_bounds = array<i64: 8, 32>}, {pipeline_mode = #tpu.pipeline_mode<synchronous>, transform_indices = @transform_1, window_bounds = array<i64: 32, 64>}, {pipeline_mode = #tpu.pipeline_mode<synchronous>, transform_indices = @transform_2, window_bounds = array<i64: 1, 64>}, {pipeline_mode = #tpu.pipeline_mode<synchronous>, transform_indices = @transform_3, window_bounds = array<i64: 64, 128>}, {pipeline_mode = #tpu.pipeline_mode<synchronous>, transform_indices = @transform_4, window_bounds = array<i64: 1, 128>}, {pipeline_mode = #tpu.pipeline_mode<synchronous>, transform_indices = @transform_5, window_bounds = array<i64: 128, 1280>}, {pipeline_mode = #tpu.pipeline_mode<synchronous>, transform_indices = @transform_6, window_bounds = array<i64: 1, 1280>}, {pipeline_mode = #tpu.pipeline_mode<synchronous>, transform_indices = @transform_7, window_bounds = array<i64: 640, 128>}, {pipeline_mode = #tpu.pipeline_mode<synchronous>, transform_indices = @transform_8, window_bounds = array<i64: 1, 128>}, {transform_indices = @transform_9, window_bounds = array<i64: 8, 128>}]} {
    %c0 = arith.constant 0 : index
    %c0_0 = arith.constant 0 : index
    %0 = vector.load %arg1[%c0, %c0_0] : memref<8x32xf32, #tpu.memory_space<vmem>>, vector<8x32xf32>
    %1 = arith.truncf %0 : vector<8x32xf32> to vector<8x32xbf16>
    %c0_1 = arith.constant 0 : index
    %c0_2 = arith.constant 0 : index
    %2 = vector.load %arg2[%c0_1, %c0_2] : memref<32x64xbf16, #tpu.memory_space<vmem>>, vector<32x64xbf16>
    %cst = arith.constant dense<0.000000e+00> : vector<8x64xf32>
    %3 = tpu.matmul %1, %2, %cst {dimension_numbers = #tpu.dot_dimension_numbers<[1], [0], [0], [1], [0, 0, 1, 1], [], []>} : vector<8x32xbf16>, vector<32x64xbf16>, vector<8x64xf32> -> vector<8x64xf32>
    %c0_3 = arith.constant 0 : index
    %c0_4 = arith.constant 0 : index
    %4 = vector.load %arg3[%c0_3, %c0_4] : memref<1x64xf32, #tpu.memory_space<vmem>>, vector<1x64xf32>
    %5 = vector.broadcast %4 : vector<1x64xf32> to vector<8x64xf32>
    %6 = arith.addf %3, %5 : vector<8x64xf32>
    %cst_5 = arith.constant 0.000000e+00 : f32
    %7 = vector.broadcast %cst_5 : f32 to vector<8x64xf32>
    %8 = arith.maximumf %6, %7 : vector<8x64xf32>
    %9 = arith.truncf %8 : vector<8x64xf32> to vector<8x64xbf16>
    %c0_6 = arith.constant 0 : index
    %c0_7 = arith.constant 0 : index
    %10 = vector.load %arg4[%c0_6, %c0_7] : memref<64x128xbf16, #tpu.memory_space<vmem>>, vector<64x128xbf16>
    %cst_8 = arith.constant dense<0.000000e+00> : vector<8x128xf32>
    %11 = tpu.matmul %9, %10, %cst_8 {dimension_numbers = #tpu.dot_dimension_numbers<[1], [0], [0], [1], [0, 0, 1, 1], [], []>} : vector<8x64xbf16>, vector<64x128xbf16>, vector<8x128xf32> -> vector<8x128xf32>
    %c0_9 = arith.constant 0 : index
    %c0_10 = arith.constant 0 : index
    %12 = vector.load %arg5[%c0_9, %c0_10] : memref<1x128xf32, #tpu.memory_space<vmem>>, vector<1x128xf32>
    %13 = vector.broadcast %12 : vector<1x128xf32> to vector<8x128xf32>
    %14 = arith.addf %11, %13 : vector<8x128xf32>
    %cst_11 = arith.constant 0.000000e+00 : f32
    %15 = vector.broadcast %cst_11 : f32 to vector<8x128xf32>
    %16 = arith.maximumf %14, %15 : vector<8x128xf32>
    %17 = arith.truncf %16 : vector<8x128xf32> to vector<8x128xbf16>
    %c0_12 = arith.constant 0 : index
    %c0_13 = arith.constant 0 : index
    %18 = vector.load %arg6[%c0_12, %c0_13] : memref<128x1280xbf16, #tpu.memory_space<vmem>>, vector<128x1280xbf16>
    %cst_14 = arith.constant dense<0.000000e+00> : vector<8x1280xf32>
    %19 = tpu.matmul %17, %18, %cst_14 {dimension_numbers = #tpu.dot_dimension_numbers<[1], [0], [0], [1], [0, 0, 1, 1], [], []>} : vector<8x128xbf16>, vector<128x1280xbf16>, vector<8x1280xf32> -> vector<8x1280xf32>
    %c0_15 = arith.constant 0 : index
    %c0_16 = arith.constant 0 : index
    %20 = vector.load %arg7[%c0_15, %c0_16] : memref<1x1280xf32, #tpu.memory_space<vmem>>, vector<1x1280xf32>
    %21 = vector.broadcast %20 : vector<1x1280xf32> to vector<8x1280xf32>
    %22 = arith.addf %19, %21 : vector<8x1280xf32>
    %23 = vector.extract_strided_slice %22 {offsets = [0, 0], sizes = [8, 640], strides = [1, 1]} : vector<8x1280xf32> to vector<8x640xf32>
    %24 = vector.extract_strided_slice %22 {offsets = [0, 640], sizes = [8, 640], strides = [1, 1]} : vector<8x1280xf32> to vector<8x640xf32>
    %25 = arith.mulf %23, %24 : vector<8x640xf32>
    %26 = arith.truncf %25 : vector<8x640xf32> to vector<8x640xbf16>
    %c0_17 = arith.constant 0 : index
    %c0_18 = arith.constant 0 : index
    %27 = vector.load %arg8[%c0_17, %c0_18] : memref<640x128xbf16, #tpu.memory_space<vmem>>, vector<640x128xbf16>
    %cst_19 = arith.constant dense<0.000000e+00> : vector<8x128xf32>
    %28 = tpu.matmul %26, %27, %cst_19 {dimension_numbers = #tpu.dot_dimension_numbers<[1], [0], [0], [1], [0, 0, 1, 1], [], []>} : vector<8x640xbf16>, vector<640x128xbf16>, vector<8x128xf32> -> vector<8x128xf32>
    %c0_20 = arith.constant 0 : index
    %c0_21 = arith.constant 0 : index
    %29 = vector.load %arg9[%c0_20, %c0_21] : memref<1x128xf32, #tpu.memory_space<vmem>>, vector<1x128xf32>
    %30 = vector.broadcast %29 : vector<1x128xf32> to vector<8x128xf32>
    %31 = arith.addf %28, %30 : vector<8x128xf32>
    %32 = tpu.iota {dimensions = array<i32: 1>} : vector<8x128xi32>
    %33 = math.tanh %31 : vector<8x128xf32>
    %cst_22 = arith.constant -5.000000e+00 : f32
    %cst_23 = arith.constant 2.000000e+00 : f32
    %34 = vector.broadcast %cst_22 : f32 to vector<8x128xf32>
    %35 = arith.maximumf %34, %31 : vector<8x128xf32>
    %36 = vector.broadcast %cst_23 : f32 to vector<8x128xf32>
    %37 = arith.minimumf %36, %35 : vector<8x128xf32>
    %38 = math.exp %37 : vector<8x128xf32>
    %c8_i32 = arith.constant 8 : i32
    %39 = vector.broadcast %c8_i32 : i32 to vector<8x128xi32>
    %40 = arith.cmpi slt, %32, %39 : vector<8x128xi32>
    %41 = arith.select %40, %33, %38 : vector<8x128xi1>, vector<8x128xf32>
    %c0_24 = arith.constant 0 : index
    %c0_25 = arith.constant 0 : index
    %42 = vector.load %arg10[%c0_24, %c0_25] : memref<8x128xf32, #tpu.memory_space<vmem>>, vector<8x128xf32>
    tpu.vector_store %arg10[%c0_24, %c0_25], %41 {strides = array<i32>} : memref<8x128xf32, #tpu.memory_space<vmem>>, vector<8x128xf32>,
    return
  }
  func.func @transform_0(%arg0: i32) -> (i32, i32) {
    %c0_i32 = arith.constant 0 : i32
    %c0_i32_0 = arith.constant 0 : i32
    return %arg0, %c0_i32 : i32, i32
  }
  func.func @transform_1(%arg0: i32) -> (i32, i32) {
    %c0_i32 = arith.constant 0 : i32
    %c0_i32_0 = arith.constant 0 : i32
    %c0_i32_1 = arith.constant 0 : i32
    return %c0_i32, %c0_i32_0 : i32, i32
  }
  func.func @transform_2(%arg0: i32) -> (i32, i32) {
    %c0_i32 = arith.constant 0 : i32
    %c0_i32_0 = arith.constant 0 : i32
    %c0_i32_1 = arith.constant 0 : i32
    return %c0_i32, %c0_i32_0 : i32, i32
  }
  func.func @transform_3(%arg0: i32) -> (i32, i32) {
    %c0_i32 = arith.constant 0 : i32
    %c0_i32_0 = arith.constant 0 : i32
    %c0_i32_1 = arith.constant 0 : i32
    return %c0_i32, %c0_i32_0 : i32, i32
  }
  func.func @transform_4(%arg0: i32) -> (i32, i32) {
    %c0_i32 = arith.constant 0 : i32
    %c0_i32_0 = arith.constant 0 : i32
    %c0_i32_1 = arith.constant 0 : i32
    return %c0_i32, %c0_i32_0 : i32, i32
  }
  func.func @transform_5(%arg0: i32) -> (i32, i32) {
    %c0_i32 = arith.constant 0 : i32
    %c0_i32_0 = arith.constant 0 : i32
    %c0_i32_1 = arith.constant 0 : i32
    return %c0_i32, %c0_i32_0 : i32, i32
  }
  func.func @transform_6(%arg0: i32) -> (i32, i32) {
    %c0_i32 = arith.constant 0 : i32
    %c0_i32_0 = arith.constant 0 : i32
    %c0_i32_1 = arith.constant 0 : i32
    return %c0_i32, %c0_i32_0 : i32, i32
  }
  func.func @transform_7(%arg0: i32) -> (i32, i32) {
    %c0_i32 = arith.constant 0 : i32
    %c0_i32_0 = arith.constant 0 : i32
    %c0_i32_1 = arith.constant 0 : i32
    return %c0_i32, %c0_i32_0 : i32, i32
  }
  func.func @transform_8(%arg0: i32) -> (i32, i32) {
    %c0_i32 = arith.constant 0 : i32
    %c0_i32_0 = arith.constant 0 : i32
    %c0_i32_1 = arith.constant 0 : i32
    return %c0_i32, %c0_i32_0 : i32, i32
  }
  func.func @transform_9(%arg0: i32) -> (i32, i32) {
    %c0_i32 = arith.constant 0 : i32
    %c0_i32_0 = arith.constant 0 : i32
    return %arg0, %c0_i32 : i32, i32
  }
}

</mosaic_0001>

<bundles_post_ra>
// kernel: tpu_custom_call.1
= control target key start
LH: loop header
LB: loop body
LE: loop exit
PB: predicated region body
PF: predicated region fallthrough
CT: control target
= control target key end

     0   :  { %14 = vsyncpa [#allocation3], 0  ;;  %s2224_s0 = inlined_call_operand.hbm [shape: f32[8,32], index: 0, kind: input, shape index: {}]   ;;  %s2225_s1 = inlined_call_operand.hbm [shape: bf16[32,64], index: 1, kind: input, shape index: {}]   ;;  %s2226_s2 = inlined_call_operand.vmem [shape: f32[1,64], index: 2, kind: input, shape index: {}]   ;;  %s2227_s3 = inlined_call_operand.hbm [shape: bf16[64,128], index: 3, kind: input, shape index: {}]   ;;  %s2228_s4 = inlined_call_operand.vmem [shape: f32[1,128], index: 4, kind: input, shape index: {}]   ;;  %s2229_s5 = inlined_call_operand.hbm [shape: bf16[128,1280], index: 5, kind: input, shape index: {}]   ;;  %s2230_s6 = inlined_call_operand.hbm [shape: f32[1,1280], index: 6, kind: input, shape index: {}]   ;;  %s2231_s7 = inlined_call_operand.hbm [shape: bf16[640,128], index: 7, kind: input, shape index: {}]   ;;  %s2232_s8 = inlined_call_operand.vmem [shape: f32[1,128], index: 8, kind: input, shape index: {}]   ;;  %s2233_s9 = inlined_call_operand.hbm [shape: f32[8,128], index: 9, kind: output, shape index: {}]  }
   0x1   :  { %15 = vsyncpa [#allocation6], 0 }
   0x2   :  { %16 = vsyncpa [#allocation9], 0 }
   0x3   :  { %17 = vsyncpa [#allocation12], 0  ;;  %s34_s11 = sshll.u32 %s2225_s1, 4  ;;  %s35_s11 = int_to_ptr.hbm [resolvable:$true] %s34_s11 }
   0x4   :  { %18 = vsyncpa [#allocation4], 0  ;;  %s2111_s12 = smov [#allocation5]   ;;  %s64_s16 = sshll.u32 %s2229_s5, 4  ;;  %s65_s16 = int_to_ptr.hbm [resolvable:$true] %s64_s16 }
   0x5   :  { %s36_s13 = sshll.u32 %s2111_s12, 4  ;;  %s2112_s17 = smov 64   ;;  %s37_s13 = int_to_ptr.vmem [resolvable:$true] %s36_s13 }
   0x6   :  { %s2113_s18 = smov 4   ;;  %s2114_s19 = smov [#allocation8]  }
   0x7   :  { %42 = dma.hbm_to_vmem [thread:$0]  %s35_s11, 256, %s37_s13, [#allocation6], %s2112_s17, %s2112_s17, %s2113_s18  }
   0x8   :  { %s66_s20 = sshll.u32 %s2114_s19, 4  ;;  %s2115_s1 = smov 640   ;;  %s67_s20 = int_to_ptr.vmem [resolvable:$true] %s66_s20 }
   0x9   :  { %s2116_s21 = smov 40   ;;  %s24_s24 = sshll.u32 %s2224_s0, 4  ;;  %s25_s24 = int_to_ptr.hbm [resolvable:$true] %s24_s24 }
   0xa   :  { %72 = dma.hbm_to_vmem [thread:$0]  %s65_s16, 10240, %s67_s20, [#allocation9], %s2115_s1, %s2115_s1, %s2116_s21  }
   0xb   :  { %s2117_s25 = smov [#allocation2]   ;;  %s49_s28 = sshll.u32 %s2227_s3, 4  ;;  %s50_s28 = int_to_ptr.hbm [resolvable:$true] %s49_s28 }
   0xc   :  { %s26_s5 = sshll.u32 %s2117_s25, 4  ;;  %s2118_s29 = smov [#allocation7]   ;;  %s27_s5 = int_to_ptr.vmem [resolvable:$true] %s26_s5 }
   0xd   :  { %29 = dma.hbm_to_vmem [thread:$0]  %s25_s24, 128, %s27_s5, [#allocation3]  }
   0xe   :  { %s51_s30 = sshll.u32 %s2118_s29, 4  ;;  %s78_s12 = sshll.u32 %s2230_s6, 4  ;;  %s52_s30 = int_to_ptr.vmem [resolvable:$true] %s51_s30  ;;  %s79_s12 = int_to_ptr.hbm [resolvable:$true] %s78_s12 }
   0xf   :  { %57 = dma.hbm_to_vmem [thread:$0]  %s50_s28, 512, %s52_s30, [#allocation6], %s2112_s17, %s2112_s17, %s2113_s18  }
  0x10   :  { %s88_s14 = sshll.u32 %s2231_s7, 4  ;;  %s2119_s15 = smov [#allocation10]   ;;  %s89_s14 = int_to_ptr.hbm [resolvable:$true] %s88_s14 }
  0x11   :  { %s80_s3 = sshll.u32 %s2119_s15, 4  ;;  %s2120_s16 = smov [#allocation11]   ;;  %s81_s3 = int_to_ptr.vmem [resolvable:$true] %s80_s3 }
  0x12   :  { %83 = dma.hbm_to_vmem [thread:$0]  %s79_s12, 160, %s81_s3, [#allocation9]  }
  0x13   :  { %s90_s19 = sshll.u32 %s2120_s16, 4  ;;  %s91_s19 = int_to_ptr.vmem [resolvable:$true] %s90_s19 }
  0x14   :  { %96 = dma.hbm_to_vmem [thread:$0]  %s89_s14, 5120, %s91_s19, [#allocation12], %s2112_s17, %s2112_s17, %s2113_s18  }
  0x15   :  { %2101 = dma.done.wait [#allocation3], 128  }
  0x16   :  { %2102 = vsyncadd [#allocation3], 4294967168 }
  0x17   :  { %2103 = dma.done.wait [#allocation6], 768  }
  0x18   :  { %2104 = vsyncadd [#allocation6], 4294966528 }
  0x19   :  { %2105 = dma.done.wait [#allocation9], 10400  }
  0x1a   :  { %2106 = vsyncadd [#allocation9], 4294956896 }
  0x1b   :  { %2107 = dma.done.wait [#allocation12], 5120  }
  0x1c   :  { %2108 = vsyncadd [#allocation12], 4294962176  ;;  %v1790_v0 = vld [vmem:[#allocation5 + $0x8] sm:$0xff]  ;;  %v1789_v1 = vld [vmem:[#allocation5] sm:$0xff]  ;;  %vm146_vm0 = vcmask 261120   ;;  %vm201_vm1 = vcmask 523264  }
  0x1d   :  { %156 = vmatpush.bf16.msra.mxu1 %v1790_v0  ;;  %v124_v2 = vld [vmem:[#allocation2] sm:$0xff]  ;;  %v1794_v3 = vld [vmem:[#allocation7 + $0x18] sm:$0xff]  ;;  %v1793_v5 = vld [vmem:[#allocation7 + $0x10] sm:$0xff]  ;;  %s2121_s20 = smov [#allocation13]   ;;  %s1270_s22 = sshll.u32 %s2233_s9, 4  ;;  %s1271_s22 = int_to_ptr.hbm [resolvable:$true] %s1270_s22 }
  0x1e   :  { %v125_v4 = vpack.c.bf16 %v124_v2, %v124_v2  ;;  %v1792_v6 = vld [vmem:[#allocation7 + $0x8] sm:$0xff]  ;;  %v1791_v7 = vld [vmem:[#allocation7] sm:$0xff]  ;;  %v1591_v8 = vld [vmem:[#allocation8 + $0x230] sm:$0xf]  ;;  %s1268_s1 = sshll.u32 %s2121_s20, 4  ;;  %s1269_s1 = int_to_ptr.vmem [resolvable:$true] %s1268_s1 }
  0x1f   :  { %v1870_v9 = vld [vmem:[#allocation8 + $0x254] sm:$0xf0]  ;;  %v1865_v10 = vld [vmem:[#allocation8 + $0x234] sm:$0xf]  ;;  %v1593_v12 = vld [vmem:[#allocation8 + $0x258] sm:$0xf0] }
  0x20   :  { %v1592_v11 = vor.u32 %v1870_v9, %v1591_v8  ;;  %v1551_v13 = vld [vmem:[#allocation8 + $0x1e0] sm:$0xf]  ;;  %v1860_v14 = vld [vmem:[#allocation8 + $0x204] sm:$0xf0]  ;;  %v1596_v15 = vor.u32 %v1865_v10, %v1593_v12  ;;  %v1855_v16 = vld [vmem:[#allocation8 + $0x1e4] sm:$0xf] }
  0x21   :  { %157 = vmatpush.bf16.msra.mxu1 %v1789_v1  ;;  %v1553_v17 = vld [vmem:[#allocation8 + $0x208] sm:$0xf0]  ;;  %v1552_v18 = vor.u32 %v1860_v14, %v1551_v13  ;;  %v1511_v20 = vld [vmem:[#allocation8 + $0x190] sm:$0xf]  ;;  %v1850_v21 = vld [vmem:[#allocation8 + $0x1b4] sm:$0xf0] }
  0x22   :  { %724 = vmatpush.bf16.msra.mxu2 %v1592_v11  ;;  %737 = vmatpush.bf16.msra.mxu3 %v1596_v15  ;;  %v1556_v19 = vor.u32 %v1855_v16, %v1553_v17  ;;  %v1845_v22 = vld [vmem:[#allocation8 + $0x194] sm:$0xf]  ;;  %v1513_v23 = vld [vmem:[#allocation8 + $0x1b8] sm:$0xf0]  ;;  %v1599_v24 = vld [vmem:[#allocation8 + $0x238] sm:$0xf]  ;;  %v1512_v29 = vor.u32 %v1850_v21, %v1511_v20 }
  0x23   :  { %v1871_v25 = vld [vmem:[#allocation8 + $0x25c] sm:$0xf0]  ;;  %v1866_v27 = vld [vmem:[#allocation8 + $0x23c] sm:$0xf]  ;;  %v1601_v28 = vld [vmem:[#allocation8 + $0x260] sm:$0xf0]  ;;  %v1516_v33 = vor.u32 %v1845_v22, %v1513_v23 }
  0x24   :  { %1291 = vmatmul.msk.bf16.vlgmr.msra.gmra.mxu1 %vm146_vm0, %v125_v4  ;;  %v1600_v26 = vor.u32 %v1871_v25, %v1599_v24  ;;  %v1471_v30 = vld [vmem:[#allocation8 + $0x140] sm:$0xf]  ;;  %v1840_v31 = vld [vmem:[#allocation8 + $0x164] sm:$0xf0]  ;;  %v1604_v32 = vor.u32 %v1866_v27, %v1601_v28  ;;  %v1861_v35 = vld [vmem:[#allocation8 + $0x20c] sm:$0xf0] }
  0x25   :  { %209 = vmatpush.bf16.msrb.mxu1 %v1794_v3  ;;  %v1559_v34 = vld [vmem:[#allocation8 + $0x1e8] sm:$0xf]  ;;  %v1856_v36 = vld [vmem:[#allocation8 + $0x1ec] sm:$0xf]  ;;  %v1835_v37 = vld [vmem:[#allocation8 + $0x144] sm:$0xf]  ;;  %v1472_v43 = vor.u32 %v1840_v31, %v1471_v30 }
  0x26   :  { %725 = vmatpush.bf16.msra.mxu2 %v1552_v18  ;;  %738 = vmatpush.bf16.msra.mxu3 %v1556_v19  ;;  %v1473_v38 = vld [vmem:[#allocation8 + $0x168] sm:$0xf0]  ;;  %v1560_v39 = vor.u32 %v1861_v35, %v1559_v34  ;;  %v1561_v40 = vld [vmem:[#allocation8 + $0x210] sm:$0xf0]  ;;  %v1519_v42 = vld [vmem:[#allocation8 + $0x198] sm:$0xf] }
  0x27   :  { %750 = vmatpush.bf16.msra.mxu0 %v1600_v26  ;;  %v1564_v41 = vor.u32 %v1856_v36, %v1561_v40  ;;  %v1851_v44 = vld [vmem:[#allocation8 + $0x1bc] sm:$0xf0]  ;;  %v1846_v45 = vld [vmem:[#allocation8 + $0x19c] sm:$0xf]  ;;  %v1521_v46 = vld [vmem:[#allocation8 + $0x1c0] sm:$0xf0]  ;;  %v1476_v47 = vor.u32 %v1835_v37, %v1473_v38 }
  0x28   :  { %v1431_v48 = vld [vmem:[#allocation8 + $0xf0] sm:$0xf]  ;;  %v1830_v49 = vld [vmem:[#allocation8 + $0x114] sm:$0xf0]  ;;  %v1825_v50 = vld [vmem:[#allocation8 + $0xf4] sm:$0xf]  ;;  %v1520_v51 = vor.u32 %v1851_v44, %v1519_v42  ;;  %v1524_v53 = vor.u32 %v1846_v45, %v1521_v46 }
  0x29   :  { %210 = vmatpush.bf16.msrb.mxu1 %v1793_v5  ;;  %v1433_v52 = vld [vmem:[#allocation8 + $0x118] sm:$0xf0]  ;;  %v1479_v54 = vld [vmem:[#allocation8 + $0x148] sm:$0xf]  ;;  %v1841_v55 = vld [vmem:[#allocation8 + $0x16c] sm:$0xf0]  ;;  %v1432_v58 = vor.u32 %v1830_v49, %v1431_v48 }
  0x2a   :  { %726 = vmatpush.bf16.msra.mxu2 %v1512_v29  ;;  %739 = vmatpush.bf16.msra.mxu3 %v1516_v33  ;;  %v1836_v56 = vld [vmem:[#allocation8 + $0x14c] sm:$0xf]  ;;  %v1481_v57 = vld [vmem:[#allocation8 + $0x170] sm:$0xf0]  ;;  %v1436_v59 = vor.u32 %v1825_v50, %v1433_v52  ;;  %v1391_v60 = vld [vmem:[#allocation8 + $0xa0] sm:$0xf]  ;;  %v1480_v63 = vor.u32 %v1841_v55, %v1479_v54 }
  0x2b   :  { %751 = vmatpush.bf16.msra.mxu0 %v1560_v39  ;;  %v1820_v61 = vld [vmem:[#allocation8 + $0xc4] sm:$0xf0]  ;;  %v1815_v62 = vld [vmem:[#allocation8 + $0xa4] sm:$0xf]  ;;  %v1393_v0 = vld [vmem:[#allocation8 + $0xc8] sm:$0xf0]  ;;  %v1484_v1 = vor.u32 %v1836_v56, %v1481_v57 }
  0x2c   :  { %v1439_v2 = vld [vmem:[#allocation8 + $0xf8] sm:$0xf]  ;;  %v1831_v3 = vld [vmem:[#allocation8 + $0x11c] sm:$0xf0]  ;;  %v1826_v4 = vld [vmem:[#allocation8 + $0xfc] sm:$0xf]  ;;  %v1396_v8 = vor.u32 %v1815_v62, %v1393_v0 }
  0x2d   :  { %211 = vmatpush.bf16.msrb.mxu1 %v1792_v6  ;;  %v1441_v5 = vld [vmem:[#allocation8 + $0x120] sm:$0xf0]  ;;  %v1926_v6 = vld [vmem:[%s2226_s2] ss:$0 sm:$0xff]  ;;  %v1351_v9 = vld [vmem:[#allocation8 + $0x50] sm:$0xf]  ;;  %v1440_v12 = vor.u32 %v1831_v3, %v1439_v2 }
  0x2e   :  { %727 = vmatpush.bf16.msra.mxu2 %v1472_v43  ;;  %740 = vmatpush.bf16.msra.mxu3 %v1476_v47  ;;  %v1810_v10 = vld [vmem:[#allocation8 + $0x74] sm:$0xf0]  ;;  %v1805_v11 = vld [vmem:[#allocation8 + $0x54] sm:$0xf]  ;;  %v1353_v13 = vld [vmem:[#allocation8 + $0x78] sm:$0xf0]  ;;  %v1444_v14 = vor.u32 %v1826_v4, %v1441_v5 }
  0x2f   :  { %752 = vmatpush.bf16.msra.mxu0 %v1520_v51  ;;  %v1399_v15 = vld [vmem:[#allocation8 + $0xa8] sm:$0xf]  ;;  %v1821_v16 = vld [vmem:[#allocation8 + $0xcc] sm:$0xf0]  ;;  %v1816_v17 = vld [vmem:[#allocation8 + $0xac] sm:$0xf]  ;;  %v1352_v19 = vor.u32 %v1810_v10, %v1351_v9  ;;  %v1356_v22 = vor.u32 %v1805_v11, %v1353_v13 }
  0x30   :  { %v1401_v18 = vld [vmem:[#allocation8 + $0xd0] sm:$0xf0]  ;;  %v1311_v20 = vld [vmem:[#allocation8] sm:$0xf]  ;;  %v1800_v23 = vld [vmem:[#allocation8 + $0x24] sm:$0xf0]  ;;  %v1400_v26 = vor.u32 %v1821_v16, %v1399_v15 }
  0x31   :  { %212 = vmatpush.bf16.msrb.mxu1 %v1791_v7  ;;  %v1392_v7 = vor.u32 %v1820_v61, %v1391_v60  ;;  %v1795_v24 = vld [vmem:[#allocation8 + $0x4] sm:$0xf]  ;;  %v1313_v25 = vld [vmem:[#allocation8 + $0x28] sm:$0xf0]  ;;  %v1607_v28 = vld [vmem:[#allocation8 + $0x240] sm:$0xf]  ;;  %v1404_v31 = vor.u32 %v1816_v17, %v1401_v18  ;;  %v1312_v36 = vor.u32 %v1800_v23, %v1311_v20 }
  0x32   :  { %728 = vmatpush.bf16.msra.mxu2 %v1432_v58  ;;  %741 = vmatpush.bf16.msra.mxu3 %v1436_v59  ;;  %v1872_v29 = vld [vmem:[#allocation8 + $0x264] sm:$0xf0]  ;;  %v1867_v30 = vld [vmem:[#allocation8 + $0x244] sm:$0xf]  ;;  %v1359_v33 = vld [vmem:[#allocation8 + $0x58] sm:$0xf]  ;;  %v1316_v39 = vor.u32 %v1795_v24, %v1313_v25 }
  0x33   :  { %753 = vmatpush.bf16.msra.mxu0 %v1480_v63  ;;  %v1811_v34 = vld [vmem:[#allocation8 + $0x7c] sm:$0xf0]  ;;  %v1806_v37 = vld [vmem:[#allocation8 + $0x5c] sm:$0xf]  ;;  %v1361_v38 = vld [vmem:[#allocation8 + $0x80] sm:$0xf0]  ;;  %v1608_v40 = vor.u32 %v1872_v29, %v1607_v28 }
  0x34   :  { %v1862_v44 = vld [vmem:[#allocation8 + $0x214] sm:$0xf0]  ;;  %v1857_v45 = vld [vmem:[#allocation8 + $0x1f4] sm:$0xf]  ;;  %v1569_v46 = vld [vmem:[#allocation8 + $0x218] sm:$0xf0]  ;;  %v1360_v47 = vor.u32 %v1811_v34, %v1359_v33  ;;  %v1364_v48 = vor.u32 %v1806_v37, %v1361_v38 }
  0x35   :  { %763 = vmatpush.bf16.msra.mxu1 %v1604_v32  ;;  %v1609_v32 = vld [vmem:[#allocation8 + $0x268] sm:$0xf0]  ;;  %v1319_v49 = vld [vmem:[#allocation8 + $0x8] sm:$0xf]  ;;  %v1801_v50 = vld [vmem:[#allocation8 + $0x2c] sm:$0xf0]  ;;  %v1572_v59 = vor.u32 %v1857_v45, %v1569_v46 }
  0x36   :  { %729 = vmatpush.bf16.msra.mxu2 %v1392_v7  ;;  %742 = vmatpush.bf16.msra.mxu3 %v1396_v8  ;;  %v1612_v43 = vor.u32 %v1867_v30, %v1609_v32  ;;  %v1796_v51 = vld [vmem:[#allocation8 + $0xc] sm:$0xf]  ;;  %v1321_v52 = vld [vmem:[#allocation8 + $0x30] sm:$0xf0]  ;;  %v1873_v54 = vld [vmem:[#allocation8 + $0x26c] sm:$0xf0]  ;;  %v1320_v62 = vor.u32 %v1801_v50, %v1319_v49 }
  0x37   :  { %754 = vmatpush.bf16.msra.mxu0 %v1440_v12  ;;  %v1868_v57 = vld [vmem:[#allocation8 + $0x24c] sm:$0xf]  ;;  %v1617_v58 = vld [vmem:[#allocation8 + $0x270] sm:$0xf0]  ;;  %v1527_v60 = vld [vmem:[#allocation8 + $0x1a0] sm:$0xf] }
  0x38   :  { %v1852_v61 = vld [vmem:[#allocation8 + $0x1c4] sm:$0xf0]  ;;  %v1847_v63 = vld [vmem:[#allocation8 + $0x1a4] sm:$0xf]  ;;  %v1529_v0 = vld [vmem:[#allocation8 + $0x1c8] sm:$0xf0]  ;;  %v1620_v3 = vor.u32 %v1868_v57, %v1617_v58 }
  0x39   :  { %764 = vmatpush.bf16.msra.mxu1 %v1564_v41  ;;  %v1567_v41 = vld [vmem:[#allocation8 + $0x1f0] sm:$0xf]  ;;  %v1575_v4 = vld [vmem:[#allocation8 + $0x1f8] sm:$0xf]  ;;  %v1863_v5 = vld [vmem:[#allocation8 + $0x21c] sm:$0xf0]  ;;  %v1532_v9 = vor.u32 %v1847_v63, %v1529_v0 }
  0x3a   :  { %730 = vmatpush.bf16.msra.mxu2 %v1352_v19  ;;  %743 = vmatpush.bf16.msra.mxu3 %v1356_v22  ;;  %v1568_v56 = vor.u32 %v1862_v44, %v1567_v41  ;;  %v1858_v7 = vld [vmem:[#allocation8 + $0x1fc] sm:$0xf]  ;;  %v1577_v8 = vld [vmem:[#allocation8 + $0x220] sm:$0xf0]  ;;  %v1487_v10 = vld [vmem:[#allocation8 + $0x150] sm:$0xf] }
  0x3b   :  { %755 = vmatpush.bf16.msra.mxu0 %v1400_v26  ;;  %v1842_v11 = vld [vmem:[#allocation8 + $0x174] sm:$0xf0]  ;;  %v1837_v12 = vld [vmem:[#allocation8 + $0x154] sm:$0xf]  ;;  %v1489_v13 = vld [vmem:[#allocation8 + $0x178] sm:$0xf0]  ;;  %v1580_v15 = vor.u32 %v1858_v7, %v1577_v8 }
  0x3c   :  { %v1488_v16 = vor.u32 %v1842_v11, %v1487_v10  ;;  %v1492_v17 = vor.u32 %v1837_v12, %v1489_v13  ;;  %v1447_v18 = vld [vmem:[#allocation8 + $0x100] sm:$0xf]  ;;  %v1832_v19 = vld [vmem:[#allocation8 + $0x124] sm:$0xf0]  ;;  %v1827_v20 = vld [vmem:[#allocation8 + $0x104] sm:$0xf] }
  0x3d   :  { %765 = vmatpush.bf16.msra.mxu1 %v1524_v53  ;;  %v1615_v53 = vld [vmem:[#allocation8 + $0x248] sm:$0xf]  ;;  %v1448_v22 = vor.u32 %v1832_v19, %v1447_v18  ;;  %v1407_v24 = vld [vmem:[#allocation8 + $0xb0] sm:$0xf]  ;;  %v1822_v25 = vld [vmem:[#allocation8 + $0xd4] sm:$0xf0] }
  0x3e   :  { %731 = vmatpush.bf16.msra.mxu2 %v1312_v36  ;;  %744 = vmatpush.bf16.msra.mxu3 %v1316_v39  ;;  %v1616_v2 = vor.u32 %v1873_v54, %v1615_v53  ;;  %v1817_v26 = vld [vmem:[#allocation8 + $0xb4] sm:$0xf]  ;;  %v1408_v28 = vor.u32 %v1822_v25, %v1407_v24  ;;  %v1535_v30 = vld [vmem:[#allocation8 + $0x1a8] sm:$0xf]  ;;  %v1848_v32 = vld [vmem:[#allocation8 + $0x1ac] sm:$0xf] }
  0x3f   :  { %756 = vmatpush.bf16.msra.mxu0 %v1360_v47  ;;  %v1537_v34 = vld [vmem:[#allocation8 + $0x1d0] sm:$0xf0]  ;;  %v1367_v36 = vld [vmem:[#allocation8 + $0x60] sm:$0xf]  ;;  %v1812_v37 = vld [vmem:[#allocation8 + $0x84] sm:$0xf0] }
  0x40   :  { %v1807_v38 = vld [vmem:[#allocation8 + $0x64] sm:$0xf]  ;;  %v1368_v39 = vor.u32 %v1812_v37, %v1367_v36  ;;  %v1495_v41 = vld [vmem:[#allocation8 + $0x158] sm:$0xf]  ;;  %v1838_v45 = vld [vmem:[#allocation8 + $0x15c] sm:$0xf] }
  0x41   :  { %766 = vmatpush.bf16.msra.mxu1 %v1484_v1  ;;  %v1324_v1 = vor.u32 %v1796_v51, %v1321_v52  ;;  %v1497_v46 = vld [vmem:[#allocation8 + $0x180] sm:$0xf0]  ;;  %v1802_v49 = vld [vmem:[#allocation8 + $0x34] sm:$0xf0]  ;;  %v1797_v50 = vld [vmem:[#allocation8 + $0x14] sm:$0xf] }
  0x42   :  { %776 = vmatpush.bf16.msrb.mxu2 %v1608_v40  ;;  %789 = vmatpush.bf16.msrb.mxu3 %v1612_v43  ;;  %v1369_v40 = vld [vmem:[#allocation8 + $0x88] sm:$0xf0]  ;;  %v1500_v47 = vor.u32 %v1838_v45, %v1497_v46  ;;  %v1329_v52 = vld [vmem:[#allocation8 + $0x38] sm:$0xf0]  ;;  %v1455_v53 = vld [vmem:[#allocation8 + $0x108] sm:$0xf] }
  0x43   :  { %757 = vmatpush.bf16.msra.mxu0 %v1320_v62  ;;  %v1372_v43 = vor.u32 %v1807_v38, %v1369_v40  ;;  %v1833_v54 = vld [vmem:[#allocation8 + $0x12c] sm:$0xf0]  ;;  %v1828_v57 = vld [vmem:[#allocation8 + $0x10c] sm:$0xf]  ;;  %v1457_v58 = vld [vmem:[#allocation8 + $0x130] sm:$0xf0] }
  0x44   :  { %v1818_v62 = vld [vmem:[#allocation8 + $0xbc] sm:$0xf]  ;;  %v1417_v0 = vld [vmem:[#allocation8 + $0xe0] sm:$0xf0]  ;;  %v1335_v8 = vld [vmem:[#allocation8 + $0x18] sm:$0xf] }
  0x45   :  { %767 = vmatpush.bf16.msra.mxu1 %v1444_v14  ;;  %v1576_v14 = vor.u32 %v1863_v5, %v1575_v4  ;;  %v1808_v4 = vld [vmem:[#allocation8 + $0x6c] sm:$0xf]  ;;  %v1798_v10 = vld [vmem:[#allocation8 + $0x1c] sm:$0xf]  ;;  %v1337_v12 = vld [vmem:[#allocation8 + $0x40] sm:$0xf0] }
  0x46   :  { %777 = vmatpush.bf16.msrb.mxu2 %v1568_v56  ;;  %790 = vmatpush.bf16.msrb.mxu3 %v1572_v59  ;;  %v1456_v56 = vor.u32 %v1833_v54, %v1455_v53  ;;  %v1460_v59 = vor.u32 %v1828_v57, %v1457_v58  ;;  %v1340_v13 = vor.u32 %v1798_v10, %v1337_v12  ;;  %v1874_v18 = vld [vmem:[#allocation8 + $0x274] sm:$0xf0]  ;;  %v1869_v19 = vld [vmem:[#allocation8 + $0x254] sm:$0xf]  ;;  %v1583_v25 = vld [vmem:[#allocation8 + $0x200] sm:$0xf] }
  0x47   :  { %802 = vmatpush.bf16.msrb.mxu0 %v1616_v2  ;;  %v1375_v2 = vld [vmem:[#allocation8 + $0x68] sm:$0xf]  ;;  %v1849_v36 = vld [vmem:[#allocation8 + $0x1b4] sm:$0xf]  ;;  %v1545_v37 = vld [vmem:[#allocation8 + $0x1d8] sm:$0xf0] }
  0x48   :  { %v1881_v38 = vld [vmem:[#allocation11 + $0x30] sm:$0xff]  ;;  %v1505_v45 = vld [vmem:[#allocation8 + $0x188] sm:$0xf0]  ;;  %v1880_v46 = vld [vmem:[#allocation11 + $0x28] sm:$0xff] }
  0x49   :  { %768 = vmatpush.bf16.msra.mxu1 %v1404_v31  ;;  %v1853_v31 = vld [vmem:[#allocation8 + $0x1cc] sm:$0xf0]  ;;  %v1824_v57 = vld [vmem:[#allocation8 + $0xe4] sm:$0xf0]  ;;  %v1819_v58 = vld [vmem:[#allocation8 + $0xc4] sm:$0xf] }
  0x4a   :  { %791 = vmatpush.bf16.msrb.mxu3 %v1532_v9  ;;  %v1536_v33 = vor.u32 %v1853_v31, %v1535_v30  ;;  %v1803_v9 = vld [vmem:[#allocation8 + $0x3c] sm:$0xf0]  ;;  %v1879_v53 = vld [vmem:[#allocation11 + $0x20] sm:$0xff]  ;;  %v1888_v12 = vld [vmem:[#allocation11 + $0x68] sm:$0xff] }
  0x4b   :  { %803 = vmatpush.bf16.msrb.mxu0 %v1576_v14  ;;  %v1336_v11 = vor.u32 %v1803_v9, %v1335_v8  ;;  %v1927_v14 = vld [vmem:[%s2228_s4] ss:$0 sm:$0xff] }
  0x4c   :  { %v1882_v30 = vld [vmem:[#allocation11 + $0x38] sm:$0xff] }
  0x4d   :  { %769 = vmatpush.bf16.msra.mxu1 %v1364_v48  ;;  %v1327_v48 = vld [vmem:[#allocation8 + $0x10] sm:$0xf]  ;;  %v1890_v31 = vld [vmem:[#allocation11 + $0x78] sm:$0xff] }
  0x4e   :  { %792 = vmatpush.bf16.msrb.mxu3 %v1492_v17  ;;  %v1328_v51 = vor.u32 %v1802_v49, %v1327_v48  ;;  %v1623_v17 = vld [vmem:[#allocation8 + $0x250] sm:$0xf]  ;;  %v1898_v10 = vld [vmem:[#allocation11 + $0xb8] sm:$0xff] }
  0x4f   :  { %804 = vmatpush.bf16.msrb.mxu0 %v1536_v33  ;;  %v1463_v49 = vld [vmem:[#allocation8 + $0x110] sm:$0xf] }
  0x51   :  { %770 = vmatpush.bf16.msra.mxu1 %v1324_v1  ;;  %v1420_v1 = vor.u32 %v1818_v62, %v1417_v0  ;;  %v1383_v62 = vld [vmem:[#allocation8 + $0x70] sm:$0xf]  ;;  %v1809_v0 = vld [vmem:[#allocation8 + $0x74] sm:$0xf] }
  0xa1   :  { %v159_v21 = vpop.f32.mrf.mxu1 }
  0xa2   :  { %v160_v27 = vadd.f32 %v1926_v6, %v159_v21  ;;  %v1528_v6 = vor.u32 %v1852_v61, %v1527_v60  ;;  %v1449_v21 = vld [vmem:[#allocation8 + $0x128] sm:$0xf0]  ;;  %v1415_v60 = vld [vmem:[#allocation8 + $0xb8] sm:$0xf]  ;;  %v1823_v61 = vld [vmem:[#allocation8 + $0xdc] sm:$0xf0] }
  0xa3   :  { %v1452_v23 = vor.u32 %v1827_v20, %v1449_v21  ;;  %v1416_v63 = vor.u32 %v1823_v61, %v1415_v60  ;;  %v1625_v20 = vld [vmem:[#allocation8 + $0x278] sm:$0xf0] }
  0xa4   :  { %v163_v35 = vmax.f32 %v160_v27, 0.0  ;;  %778 = vmatpush.bf16.msrb.mxu2 %v1528_v6  ;;  %v1409_v27 = vld [vmem:[#allocation8 + $0xd8] sm:$0xf0]  ;;  %v1377_v6 = vld [vmem:[#allocation8 + $0x90] sm:$0xf0]  ;;  %v1628_v24 = vor.u32 %v1869_v19, %v1625_v20  ;;  %v1894_v19 = vld [vmem:[#allocation11 + $0x98] sm:$0xff] }
  0xa5   :  { %793 = vmatpush.bf16.msrb.mxu3 %v1452_v23  ;;  %v1412_v29 = vor.u32 %v1817_v26, %v1409_v27  ;;  %v1380_v7 = vor.u32 %v1808_v4, %v1377_v6  ;;  %v1624_v23 = vor.u32 %v1874_v18, %v1623_v17  ;;  %v1864_v26 = vld [vmem:[#allocation8 + $0x224] sm:$0xf0]  ;;  %v1859_v27 = vld [vmem:[#allocation8 + $0x204] sm:$0xf]  ;;  %v1343_v4 = vld [vmem:[#allocation8 + $0x20] sm:$0xf] }
  0xa6   :  { %v164_v42 = vpack.c.bf16 %v163_v35, %v163_v35  ;;  %v1540_v35 = vor.u32 %v1848_v32, %v1537_v34  ;;  %v1584_v32 = vor.u32 %v1864_v26, %v1583_v25  ;;  %v1543_v34 = vld [vmem:[#allocation8 + $0x1b0] sm:$0xf]  ;;  %v1799_v6 = vld [vmem:[#allocation8 + $0x24] sm:$0xf]  ;;  %v1877_v17 = vld [vmem:[#allocation11 + $0x10] sm:$0xff] }
  0xa7   :  { %v1886_v18 = vld [vmem:[#allocation11 + $0x58] sm:$0xff]  ;;  %v1876_v20 = vld [vmem:[#allocation11 + $0x8] sm:$0xff] }
  0xa8   :  { %1308 = vmatmul.msk.bf16.vlgmr.msrb.gmra.mxu1 %vm201_vm1, %v164_v42  ;;  %779 = vmatpush.bf16.msrb.mxu2 %v1488_v16  ;;  %v1843_v42 = vld [vmem:[#allocation8 + $0x17c] sm:$0xf0]  ;;  %v1884_v26 = vld [vmem:[#allocation11 + $0x48] sm:$0xff] }
  0xa9   :  { %v161_v55 = vpop.f32.mrf.mxu1  ;;  %815 = vmatpush.bf16.msrb.mxu1 %v1620_v3  ;;  %794 = vmatpush.bf16.msrb.mxu3 %v1412_v29  ;;  %v1496_v44 = vor.u32 %v1843_v42, %v1495_v41  ;;  %v1813_v3 = vld [vmem:[#allocation8 + $0x8c] sm:$0xf0]  ;;  %v1548_v41 = vor.u32 %v1849_v36, %v1545_v37  ;;  %v1503_v42 = vld [vmem:[#allocation8 + $0x160] sm:$0xf] }
  0xaa   :  { %v1332_v55 = vor.u32 %v1797_v50, %v1329_v52  ;;  %v1376_v5 = vor.u32 %v1813_v3, %v1375_v2  ;;  %v1834_v50 = vld [vmem:[#allocation8 + $0x134] sm:$0xf0]  ;;  %v1465_v52 = vld [vmem:[#allocation8 + $0x138] sm:$0xf0]  ;;  %v1914_v25 = vld [vmem:[#allocation11 + $0x138] sm:$0xff] }
  0xab   :  { %805 = vmatpush.bf16.msrb.mxu0 %v1496_v44  ;;  %v1839_v44 = vld [vmem:[#allocation8 + $0x164] sm:$0xf]  ;;  %v1464_v54 = vor.u32 %v1834_v50, %v1463_v49  ;;  %v1907_v49 = vld [vmem:[#allocation11 + $0x100] sm:$0xff] }
  0xac   :  { %780 = vmatpush.bf16.msrb.mxu2 %v1448_v22  ;;  %v1508_v48 = vor.u32 %v1839_v44, %v1505_v45  ;;  %v1902_v36 = vld [vmem:[#allocation11 + $0xd8] sm:$0xff] }
  0xad   :  { %816 = vmatpush.bf16.msrb.mxu1 %v1580_v15  ;;  %795 = vmatpush.bf16.msrb.mxu3 %v1372_v43  ;;  %v1844_v43 = vld [vmem:[#allocation8 + $0x184] sm:$0xf0]  ;;  %v300_v50 = vld [vmem:[#allocation10] sm:$0xff] }
  0xae   :  { %v1910_v37 = vld [vmem:[#allocation11 + $0x118] sm:$0xff] }
  0xaf   :  { %806 = vmatpush.bf16.msrb.mxu0 %v1456_v56  ;;  %v1423_v56 = vld [vmem:[#allocation8 + $0xc0] sm:$0xf] }
  0xb0   :  { %781 = vmatpush.bf16.msrb.mxu2 %v1408_v28  ;;  %v1585_v28 = vld [vmem:[#allocation8 + $0x228] sm:$0xf0]  ;;  %v1424_v60 = vor.u32 %v1824_v57, %v1423_v56  ;;  %v311_v56 = vperm.slane %v300_v50, 7 }
  0xb1   :  { %817 = vmatpush.bf16.msrb.mxu1 %v1540_v35  ;;  %796 = vmatpush.bf16.msrb.mxu3 %v1332_v55  ;;  %v1588_v33 = vor.u32 %v1859_v27, %v1585_v28  ;;  %v1854_v35 = vld [vmem:[#allocation8 + $0x1d4] sm:$0xf0] }
  0xb2   :  { %v1544_v40 = vor.u32 %v1854_v35, %v1543_v34  ;;  %v1892_v27 = vld [vmem:[#allocation11 + $0x88] sm:$0xff]  ;;  %v1905_v28 = vld [vmem:[#allocation11 + $0xf0] sm:$0xff]  ;;  %v1903_v34 = vld [vmem:[#allocation11 + $0xe0] sm:$0xff] }
  0xb3   :  { %807 = vmatpush.bf16.msrb.mxu0 %v1416_v63  ;;  %v1814_v63 = vld [vmem:[#allocation8 + $0x94] sm:$0xf0]  ;;  %v1911_v35 = vld [vmem:[#allocation11 + $0x120] sm:$0xff] }
  0xb4   :  { %782 = vmatpush.bf16.msrb.mxu2 %v1368_v39  ;;  %v1889_v39 = vld [vmem:[#allocation11 + $0x70] sm:$0xff]  ;;  %v1384_v2 = vor.u32 %v1814_v63, %v1383_v62  ;;  %v304_v63 = vperm.slane %v300_v50, 0 }
  0xb5   :  { %818 = vmatpush.bf16.msrb.mxu1 %v1500_v47  ;;  %v1504_v47 = vor.u32 %v1844_v43, %v1503_v42  ;;  %v1900_v42 = vld [vmem:[#allocation11 + $0xc8] sm:$0xff] }
  0xb6   :  { %v1908_v43 = vld [vmem:[#allocation11 + $0x108] sm:$0xff] }
  0xb7   :  { %808 = vmatpush.bf16.msrb.mxu0 %v1376_v5  ;;  %v1804_v5 = vld [vmem:[#allocation8 + $0x44] sm:$0xf0] }
  0xb8   :  { %783 = vmatpush.bf16.msrb.mxu2 %v1328_v51  ;;  %v1829_v51 = vld [vmem:[#allocation8 + $0x114] sm:$0xf]  ;;  %v1344_v8 = vor.u32 %v1804_v5, %v1343_v4 }
  0xb9   :  { %819 = vmatpush.bf16.msrb.mxu1 %v1460_v59  ;;  %v1468_v55 = vor.u32 %v1829_v51, %v1465_v52  ;;  %v1425_v59 = vld [vmem:[#allocation8 + $0xe8] sm:$0xf0]  ;;  %v306_v51 = vperm.slane %v300_v50, 2  ;;  %v305_v52 = vperm.slane %v300_v50, 1 }
  0xba   :  { %v1428_v61 = vor.u32 %v1819_v58, %v1425_v59 }
  0xbb   :  { %809 = vmatpush.bf16.msrb.mxu0 %v1336_v11  ;;  %v1897_v11 = vld [vmem:[#allocation11 + $0xb0] sm:$0xff] }
  0xbd   :  { %820 = vmatpush.bf16.msrb.mxu1 %v1420_v1  ;;  %v1385_v1 = vld [vmem:[#allocation8 + $0x98] sm:$0xf0] }
  0xbe   :  { %v1388_v3 = vor.u32 %v1809_v0, %v1385_v1  ;;  %v309_v0 = vperm.slane %v300_v50, 5 }
  0xc1   :  { %821 = vmatpush.bf16.msrb.mxu1 %v1380_v7  ;;  %v1345_v7 = vld [vmem:[#allocation8 + $0x48] sm:$0xf0] }
  0xc2   :  { %v1348_v9 = vor.u32 %v1799_v6, %v1345_v7 }
  0xc5   :  { %822 = vmatpush.bf16.msrb.mxu1 %v1340_v13  ;;  %v1896_v13 = vld [vmem:[#allocation11 + $0xa8] sm:$0xff] }
 0x125   :  { %v214_v15 = vpop.f32.mrf.mxu1 }
 0x126   :  { %v215_v16 = vadd.f32 %v1927_v14, %v214_v15  ;;  %v1878_v14 = vld [vmem:[#allocation11 + $0x18] sm:$0xff]  ;;  %v1887_v15 = vld [vmem:[#allocation11 + $0x60] sm:$0xff] }
 0x128   :  { %v218_v21 = vmax.f32 %v215_v16, 0.0  ;;  %v1895_v16 = vld [vmem:[#allocation11 + $0xa0] sm:$0xff] }
 0x12a   :  { %v2206_v22 = vpack.c.bf16 %v218_v21, %v218_v21  ;;  %v1885_v21 = vld [vmem:[#allocation11 + $0x50] sm:$0xff] }
 0x12c   :  { %732 = vmatmul.bf16.vlgmr.msra.gmra.mxu2 %v2206_v22  ;;  %745 = vmatmul.bf16.vlgmr.msra.gmra.mxu3 %v2206_v22 }
 0x12d   :  { %758 = vmatmul.bf16.vlgmr.msra.gmra.mxu0 %v2206_v22  ;;  %771 = vmatmul.bf16.vlgmr.msra.gmra.mxu1 %v2206_v22  ;;  %v216_v29 = vpop.f32.mrf.mxu1 }
 0x12e   :  { %828 = vmatpush.bf16.msra.mxu2 %v1624_v23  ;;  %841 = vmatpush.bf16.msra.mxu3 %v1628_v24  ;;  %v1875_v23 = vld [vmem:[#allocation11] sm:$0xff]  ;;  %v1906_v24 = vld [vmem:[#allocation11 + $0xf8] sm:$0xff]  ;;  %v1913_v29 = vld [vmem:[#allocation11 + $0x130] sm:$0xff] }
 0x12f   :  { %1188 = vmatpush.bf16.msra.mxu0 %v1882_v30  ;;  %1201 = vmatpush.bf16.msra.mxu1 %v1890_v31  ;;  %v1883_v30 = vld [vmem:[#allocation11 + $0x40] sm:$0xff] }
 0x130   :  { %v1891_v31 = vld [vmem:[#allocation11 + $0x80] sm:$0xff] }
 0x132   :  { %829 = vmatpush.bf16.msra.mxu2 %v1584_v32  ;;  %842 = vmatpush.bf16.msra.mxu3 %v1588_v33  ;;  %v1904_v32 = vld [vmem:[#allocation11 + $0xe8] sm:$0xff] }
 0x133   :  { %1189 = vmatpush.bf16.msra.mxu0 %v1881_v38  ;;  %1202 = vmatpush.bf16.msra.mxu1 %v1889_v39  ;;  %v1912_v33 = vld [vmem:[#allocation11 + $0x128] sm:$0xff]  ;;  %v1901_v38 = vld [vmem:[#allocation11 + $0xd0] sm:$0xff] }
 0x134   :  { %v1909_v39 = vld [vmem:[#allocation11 + $0x110] sm:$0xff] }
 0x136   :  { %830 = vmatpush.bf16.msra.mxu2 %v1544_v40  ;;  %843 = vmatpush.bf16.msra.mxu3 %v1548_v41 }
 0x137   :  { %1190 = vmatpush.bf16.msra.mxu0 %v1880_v46  ;;  %1203 = vmatpush.bf16.msra.mxu1 %v1888_v12 }
 0x13a   :  { %831 = vmatpush.bf16.msra.mxu2 %v1504_v47  ;;  %844 = vmatpush.bf16.msra.mxu3 %v1508_v48  ;;  %v1899_v48 = vld [vmem:[#allocation11 + $0xc0] sm:$0xff] }
 0x13b   :  { %1191 = vmatpush.bf16.msra.mxu0 %v1879_v53  ;;  %1204 = vmatpush.bf16.msra.mxu1 %v1887_v15  ;;  %v301_v15 = vld [vmem:[#allocation10 + $0x8] sm:$0x3] }
 0x13c   :  { %784 = vmatmul.bf16.vlgmr.msrb.gmra.mxu2 %v2206_v22  ;;  %797 = vmatmul.bf16.vlgmr.msrb.gmra.mxu3 %v2206_v22 }
 0x13d   :  { %810 = vmatmul.bf16.vlgmr.msrb.gmra.mxu0 %v2206_v22  ;;  %823 = vmatmul.bf16.vlgmr.msrb.gmra.mxu1 %v2206_v22 }
 0x13e   :  { %832 = vmatpush.bf16.msra.mxu2 %v1464_v54  ;;  %845 = vmatpush.bf16.msra.mxu3 %v1468_v55  ;;  %v310_v55 = vperm.slane %v300_v50, 6 }
 0x13f   :  { %1192 = vmatpush.bf16.msra.mxu0 %v1878_v14  ;;  %1205 = vmatpush.bf16.msra.mxu1 %v1886_v18  ;;  %v312_v18 = vperm.slane %v301_v15, 0 }
 0x142   :  { %833 = vmatpush.bf16.msra.mxu2 %v1424_v60  ;;  %846 = vmatpush.bf16.msra.mxu3 %v1428_v61 }
 0x143   :  { %1193 = vmatpush.bf16.msra.mxu0 %v1877_v17  ;;  %1206 = vmatpush.bf16.msra.mxu1 %v1885_v21  ;;  %v308_v17 = vperm.slane %v300_v50, 4 }
 0x146   :  { %834 = vmatpush.bf16.msra.mxu2 %v1384_v2  ;;  %847 = vmatpush.bf16.msra.mxu3 %v1388_v3 }
 0x147   :  { %1194 = vmatpush.bf16.msra.mxu0 %v1876_v20  ;;  %1207 = vmatpush.bf16.msra.mxu1 %v1884_v26 }
 0x14a   :  { %835 = vmatpush.bf16.msra.mxu2 %v1344_v8  ;;  %848 = vmatpush.bf16.msra.mxu3 %v1348_v9 }
 0x14b   :  { %1195 = vmatpush.bf16.msra.mxu0 %v1875_v23  ;;  %1208 = vmatpush.bf16.msra.mxu1 %v1883_v30 }
 0x14d   :  { %836 = vmatmul.bf16.vlgmr.msra.gmra.mxu2 %v2206_v22  ;;  %849 = vmatmul.bf16.vlgmr.msra.gmra.mxu3 %v2206_v22  ;;  %v1893_v22 = vld [vmem:[#allocation11 + $0x90] sm:$0xff] }
 0x14e   :  { %1214 = vmatpush.bf16.msrb.mxu2 %v1898_v10  ;;  %1227 = vmatpush.bf16.msrb.mxu3 %v1906_v24 }
 0x14f   :  { %1240 = vmatpush.bf16.msrb.mxu0 %v1914_v25 }
 0x152   :  { %1215 = vmatpush.bf16.msrb.mxu2 %v1897_v11  ;;  %1228 = vmatpush.bf16.msrb.mxu3 %v1905_v28 }
 0x153   :  { %1241 = vmatpush.bf16.msrb.mxu0 %v1913_v29 }
 0x156   :  { %1216 = vmatpush.bf16.msrb.mxu2 %v1896_v13  ;;  %1229 = vmatpush.bf16.msrb.mxu3 %v1904_v32 }
 0x157   :  { %1242 = vmatpush.bf16.msrb.mxu0 %v1912_v33 }
 0x15a   :  { %1217 = vmatpush.bf16.msrb.mxu2 %v1895_v16  ;;  %1230 = vmatpush.bf16.msrb.mxu3 %v1903_v34  ;;  %v307_v16 = vperm.slane %v300_v50, 3 }
 0x15b   :  { %1243 = vmatpush.bf16.msrb.mxu0 %v1911_v35 }
 0x15e   :  { %1218 = vmatpush.bf16.msrb.mxu2 %v1894_v19  ;;  %1231 = vmatpush.bf16.msrb.mxu3 %v1902_v36  ;;  %v313_v19 = vperm.slane %v301_v15, 1 }
 0x15f   :  { %1244 = vmatpush.bf16.msrb.mxu0 %v1910_v37 }
 0x162   :  { %1219 = vmatpush.bf16.msrb.mxu2 %v1893_v22  ;;  %1232 = vmatpush.bf16.msrb.mxu3 %v1901_v38  ;;  %v1928_v38 = vld [vmem:[%s2232_s8] ss:$0 sm:$0xff] }
 0x163   :  { %1245 = vmatpush.bf16.msrb.mxu0 %v1909_v39 }
 0x166   :  { %1220 = vmatpush.bf16.msrb.mxu2 %v1892_v27  ;;  %1233 = vmatpush.bf16.msrb.mxu3 %v1900_v42 }
 0x167   :  { %1246 = vmatpush.bf16.msrb.mxu0 %v1908_v43 }
 0x16a   :  { %1221 = vmatpush.bf16.msrb.mxu2 %v1891_v31  ;;  %1234 = vmatpush.bf16.msrb.mxu3 %v1899_v48 }
 0x16b   :  { %1247 = vmatpush.bf16.msrb.mxu0 %v1907_v49  ;;  %v1253_v49 = vlaneseq }
 0x1aa   :  { %v759_v40 = vpop.f32.mrf.mxu0  ;;  %v772_v41 = vpop.f32.mrf.mxu1 }
 0x1ab   :  { %v760_v59 = vadd.f32 %v759_v40, %v306_v51  ;;  %v773_v22 = vadd.f32 %v772_v41, %v307_v16 }
 0x1af   :  { %v733_v44 = vpop.f32.mrf.mxu2  ;;  %v746_v45 = vpop.f32.mrf.mxu3 }
 0x1b0   :  { %v747_v60 = vadd.f32 %v746_v45, %v305_v52  ;;  %v734_v7 = vadd.f32 %v733_v44, %v304_v63  ;;  %v1254_v52 = vand.u32 127, %v1253_v49 }
 0x1b2   :  { %v761_v46 = vpop.f32.mrf.mxu0  ;;  %v774_v47 = vpop.f32.mrf.mxu1  ;;  %vm1260_vm2 = vcmp.lt.s32.totalorder %v1254_v52, 8 }
 0x1b7   :  { %v735_v53 = vpop.f32.mrf.mxu2  ;;  %v748_v54 = vpop.f32.mrf.mxu3 }
 0x1ba   :  { %v811_v57 = vpop.f32.mrf.mxu0  ;;  %v824_v58 = vpop.f32.mrf.mxu1 }
 0x1bb   :  { %v812_v61 = vadd.f32 %v811_v57, %v310_v55  ;;  %v825_v62 = vadd.f32 %v824_v58, %v311_v56 }
 0x1bd   :  { %v855_v1 = vmul.f32 %v812_v61, %v747_v60  ;;  %v856_v2 = vmul.f32 %v825_v62, %v760_v59 }
 0x1bf   :  { %v860_v3 = vpack.c.bf16 %v855_v1, %v855_v1  ;;  %v861_v4 = vpack.c.bf16 %v856_v2, %v856_v2  ;;  %v785_v5 = vpop.f32.mrf.mxu2  ;;  %v798_v6 = vpop.f32.mrf.mxu3 }
 0x1c0   :  { %v799_v8 = vadd.f32 %v798_v6, %v309_v0  ;;  %v786_v23 = vadd.f32 %v785_v5, %v308_v17 }
 0x1c1   :  { %1209 = vmatmul.bf16.vlgmr.msra.gmra.mxu1 %v860_v3  ;;  %1222 = vmatmul.bf16.vlgmr.msrb.gmra.mxu2 %v861_v4 }
 0x1c2   :  { %v854_v9 = vmul.f32 %v799_v8, %v734_v7  ;;  %v813_v10 = vpop.f32.mrf.mxu0  ;;  %v826_v11 = vpop.f32.mrf.mxu1 }
 0x1c4   :  { %v859_v12 = vpack.c.bf16 %v854_v9, %v854_v9 }
 0x1c6   :  { %1196 = vmatmul.bf16.vlgmr.msra.gmra.mxu0 %v859_v12 }
 0x1c7   :  { %v787_v13 = vpop.f32.mrf.mxu2  ;;  %v800_v14 = vpop.f32.mrf.mxu3 }
 0x1d0   :  { %v837_v20 = vpop.f32.mrf.mxu2  ;;  %v850_v21 = vpop.f32.mrf.mxu3 }
 0x1d1   :  { %v838_v24 = vadd.f32 %v837_v20, %v312_v18  ;;  %v851_v25 = vadd.f32 %v850_v21, %v313_v19 }
 0x1d3   :  { %v857_v26 = vmul.f32 %v838_v24, %v773_v22  ;;  %v858_v27 = vmul.f32 %v851_v25, %v786_v23 }
 0x1d5   :  { %v862_v28 = vpack.c.bf16 %v857_v26, %v857_v26  ;;  %v863_v29 = vpack.c.bf16 %v858_v27, %v858_v27 }
 0x1d7   :  { %1235 = vmatmul.bf16.vlgmr.msrb.gmra.mxu3 %v862_v28  ;;  %1248 = vmatmul.bf16.vlgmr.msrb.gmra.mxu0 %v863_v29 }
 0x1d8   :  { %v839_v30 = vpop.f32.mrf.mxu2  ;;  %v852_v31 = vpop.f32.mrf.mxu3 }
 0x23e   :  { %v1210_v32 = vpop.f32.mrf.mxu1 }
 0x243   :  { %v1197_v33 = vpop.f32.mrf.mxu0 }
 0x244   :  { %v1223_v34 = vpop.f32.mrf.mxu2  ;;  %v1198_v39 = vadd.f32 %v1928_v38, %v1197_v33 }
 0x246   :  { %v1212_v35 = vpop.f32.mrf.mxu1  ;;  %v1211_v41 = vadd.f32 %v1210_v32, %v1198_v39 }
 0x248   :  { %v1224_v42 = vadd.f32 %v1223_v34, %v1211_v41 }
 0x24b   :  { %v1199_v36 = vpop.f32.mrf.mxu0 }
 0x24c   :  { %v1225_v37 = vpop.f32.mrf.mxu2 }
 0x254   :  { %v1249_v40 = vpop.f32.mrf.mxu0 }
 0x25a   :  { %v1236_v43 = vpop.f32.mrf.mxu3 }
 0x25b   :  { %v1237_v44 = vadd.f32 %v1236_v43, %v1224_v42 }
 0x25c   :  { %v1251_v45 = vpop.f32.mrf.mxu0 }
 0x25d   :  { %v1250_v46 = vadd.f32 %v1249_v40, %v1237_v44 }
 0x25f   :  { %v1256_v47 = vmax.f32 %v1250_v46, -5.0  ;;  %1929 = vtanh.f32 %v1250_v46 }
 0x261   :  { %v1257_v48 = vmin.f32 %v1256_v47, 2.0 }
 0x262   :  { %v1238_v50 = vpop.f32.mrf.mxu3 }
 0x263   :  { %v1258_v51 = vmul.f32 1.442695, %v1257_v48 }
 0x265   :  { %1931 = vpow2.f32 %v1258_v51  ;;  %v1930_v53 = vpop.eup %1929 }
 0x26b   :  { %v1932_v54 = vpop.eup %1931 }
 0x26c   :  { %v1261_v55 = vsel %vm1260_vm2, %v1930_v53, %v1932_v54 }
 0x26d   :  { %1262 = vst [vmem:[#allocation13] sm:$0xff] %v1261_v55 }
 0x26e   :  { %1273 = dma.vmem_to_hbm [thread:$0]  %s1269_s1, 128, %s1271_s22, [#allocation4]  }
 0x26f   :  { %2109 = dma.done.wait [#allocation4], 128  }
 0x270   :  { %2110 = vsyncadd [#allocation4], 4294967168 }
 0x271   :  { %1278 = vsyncpa [#allocation3], 1 }
 0x272   :  { %1279 = vsyncpa [#allocation6], 1 }
 0x273   :  { %1280 = vsyncpa [#allocation9], 1 }
 0x274   :  { %1281 = vsyncpa [#allocation12], 1 }
 0x275   :  { %1282 = vsyncpa [#allocation4], 1 }

</bundles_post_ra>
